<compile_context>
chip_gen: v5e
topology: v5e:2x2
jax: 0.10.0
libtpu: 0.0.40
codegen_flags: <defaults>
</compile_context>

<pallas_src>
import functools

import jax
import jax.numpy as jnp
from jax.experimental import pallas as pl
from jax.experimental.pallas import tpu as pltpu


def _deconv_kernel(k_ref, w_ref, b_ref, o_ref):
    """One (batch, row-tile) grid step: a single MXU matmul + bias + ReLU.

    k_ref : (16*Cg, 4*Hr*W)  zero-padded im2col block; columns = output pixels
                             of this row tile in NCHW order.
    w_ref : (Cout, 16*Cg)    dense (kh, kw, cin) weight matrix.
    b_ref : (Cout, 1)        f32 bias.
    o_ref : (Cout, 4*Hr*W)   output block, lane-dense, already NCHW-ordered.
    """
    acc = jnp.dot(w_ref[...], k_ref[...], preferred_element_type=jnp.float32)
    o_ref[...] = jnp.maximum(acc + b_ref[...], 0.0).astype(o_ref.dtype)


def _pick_row_tile(H, W, k_rows, itemsize, budget=4 << 20):
    """Largest row tile Hr dividing H whose K block fits `budget` bytes and whose
    flattened output width (4*Hr*W) is a multiple of 128 lanes."""
    def blk_bytes(hr):
        return k_rows * 4 * hr * W * itemsize

    if blk_bytes(H) <= budget:
        return H                      # whole image per step (full-dim block: always legal)
    fallback = 1
    for hr in range(H - 1, 0, -1):
        if H % hr or blk_bytes(hr) > budget:
            continue
        if (4 * hr * W) % 128 == 0:
            return hr                 # largest lane-aligned divisor under budget
        fallback = max(fallback, hr)  # correct, but lane-masked stores
    return fallback


@jax.jit
def deconv_blk_pallas(x, weight, bias):
    """ConvTranspose2d(k=4, s=2, p=1) + ReLU.

    x: [N, Cin, H, W]; weight: [Cin, Cout, 4, 4] (PyTorch ConvTranspose2d layout);
    bias: [Cout].  Returns [N, Cout, 2H, 2W].
    """
    N, Cin, H, W = x.shape
    Cout = weight.shape[1]
    dtype = x.dtype
    Cg = ((Cin + 7) // 8) * 8                      # sublane-align the channel dim
    k_rows = 16 * Cg

    Hr = _pick_row_tile(H, W, k_rows, jnp.dtype(dtype).itemsize)
    nr = H // Hr

    # ---- zero-padded im2col K: columns are output pixels in NCHW order --------
    # Output (oh, ow) receives tap (kh, kw) iff oh ≡ kh+1 and ow ≡ kw+1 (mod 2),
    # reading x_pad[:, :, (oh+3-kh)//2, (ow+3-kw)//2]  (x_pad = x zero-padded by 1).
    x_pad = jnp.pad(x, ((0, 0), (0, 0), (1, 1), (1, 1)))
    K = jnp.zeros((N, 4, 4, Cg, H, 2, W, 2), dtype)   # (n, kh, kw, c, p, a, q, b)
    for kh in range(4):
        a = (kh + 1) % 2                    # output-row parity this tap feeds
        rs = (a + 3 - kh) // 2              # padded input-row shift
        for kw in range(4):
            b = (kw + 1) % 2
            cs = (b + 3 - kw) // 2
            K = K.at[:, kh, kw, :Cin, :, a, :, b].set(
                x_pad[:, :, rs:rs + H, cs:cs + W])
    K = K.reshape(N, k_rows, 4 * H * W)

    # ---- dense tap/channel weight matrix: row = cout, col = (kh, kw, cin) -----
    w_big = jnp.zeros((Cout, 4, 4, Cg), dtype)
    w_big = w_big.at[:, :, :, :Cin].set(jnp.transpose(weight, (1, 2, 3, 0)))
    w_big = w_big.reshape(Cout, k_rows)
    # TODO(synk): for large C, cast K/w_big to bf16 here (keep the f32 accumulator)
    # and single-buffer the constant weight block / set vmem_limit_bytes for v7x.
    b_big = bias.reshape(Cout, 1).astype(jnp.float32)  # f32 bias until after ReLU

    out_flat = pl.pallas_call(
        _deconv_kernel,
        out_shape=jax.ShapeDtypeStruct((N, Cout, 4 * H * W), dtype),
        grid_spec=pltpu.PrefetchScalarGridSpec(
            num_scalar_prefetch=0,
            grid=(N, nr),
            in_specs=[
                pl.BlockSpec((None, k_rows, 4 * Hr * W), lambda n, r: (n, 0, r)),
                pl.BlockSpec((Cout, k_rows), lambda n, r: (0, 0)),
                pl.BlockSpec((Cout, 1), lambda n, r: (0, 0)),
            ],
            out_specs=pl.BlockSpec((None, Cout, 4 * Hr * W),
                                   lambda n, r: (n, 0, r)),
        ),
        compiler_params=pltpu.CompilerParams(
            dimension_semantics=("parallel", "parallel")),
    )(K, w_big, b_big)

    # Columns are already (oh, ow) row-major -> this reshape is free (metadata only).
    return out_flat.reshape(N, Cout, 2 * H, 2 * W)


def deconv_blk_reference(x_nchw, weight, bias):
    """Pure-JAX reference: conv_transpose via lhs-dilated conv with flipped kernel."""
    w_flip = weight[:, :, ::-1, ::-1]
    rhs = jnp.transpose(w_flip, (1, 0, 2, 3))      # [Cout, Cin, kh, kw]
    out = jax.lax.conv_general_dilated(
        x_nchw, rhs,
        window_strides=(1, 1),
        padding=((2, 2), (2, 2)),                  # K - 1 - padding = 2
        lhs_dilation=(2, 2),
        dimension_numbers=("NCHW", "OIHW", "NCHW"))
    out = out + bias[None, :, None, None]
    return jnp.maximum(out, 0.0)


if __name__ == "__main__":
    N, C, H, W = 2, 4, 16, 16
    key = jax.random.PRNGKey(0)
    k_w, k_b, k_x = jax.random.split(key, 3)

    # ConvTranspose2d(C, C, 4) parameter shapes: weight [Cin, Cout, 4, 4], bias [Cout].
    weight = 0.1 * jax.random.normal(k_w, (C, C, 4, 4), jnp.float32)
    bias = 0.1 * jax.random.normal(k_b, (C,), jnp.float32)
    x = jax.random.normal(k_x, (N, C, H, W), jnp.float32)

    out = jax.block_until_ready(deconv_blk_pallas(x, weight, bias))
    ref = jax.block_until_ready(deconv_blk_reference(x, weight, bias))

    assert out.shape == (N, C, 2 * H, 2 * W), out.shape
    err = float(jnp.max(jnp.abs(out - ref)))
    assert jnp.allclose(out, ref, atol=1e-4, rtol=1e-4), err
    print("KERNEL_OK")
</pallas_src>

<mosaic_0001>
module attributes {stable_mosaic.version = 11 : i64} {
  func.func @_deconv_kernel(%arg0: i32, %arg1: i32, %arg2: memref<1x128x1024xf32, #tpu.memory_space<vmem>>, %arg3: memref<4x128xf32, #tpu.memory_space<vmem>>, %arg4: memref<4x1xf32, #tpu.memory_space<vmem>>, %arg5: memref<1x4x1024xf32, #tpu.memory_space<vmem>>) attributes {dimension_semantics = [#tpu.dimension_semantics<parallel>, #tpu.dimension_semantics<parallel>], iteration_bounds = array<i64: 2, 1>, scalar_prefetch = 0 : i64, scratch_operands = 0 : i64, tpu.core_type = #tpu.core_type<tc>, window_params = [{transform_indices = @transform_0, window_bounds = array<i64: 1, 128, 1024>}, {pipeline_mode = #tpu.pipeline_mode<synchronous>, transform_indices = @transform_1, window_bounds = array<i64: 4, 128>}, {pipeline_mode = #tpu.pipeline_mode<synchronous>, transform_indices = @transform_2, window_bounds = array<i64: 4, 1>}, {transform_indices = @transform_3, window_bounds = array<i64: 1, 4, 1024>}]} {
    %c0 = arith.constant 0 : index
    %c0_0 = arith.constant 0 : index
    %0 = vector.load %arg3[%c0, %c0_0] : memref<4x128xf32, #tpu.memory_space<vmem>>, vector<4x128xf32>
    %c0_1 = arith.constant 0 : index
    %c0_2 = arith.constant 0 : index
    %c0_3 = arith.constant 0 : index
    %1 = vector.load %arg2[%c0_1, %c0_2, %c0_3] : memref<1x128x1024xf32, #tpu.memory_space<vmem>>, vector<1x128x1024xf32>
    %2 = vector.shape_cast %1 : vector<1x128x1024xf32> to vector<128x1024xf32>
    %cst = arith.constant dense<0.000000e+00> : vector<4x1024xf32>
    %3 = tpu.matmul %0, %2, %cst {dimension_numbers = #tpu.dot_dimension_numbers<[1], [0], [0], [1], [0, 0, 1, 1], [], []>} : vector<4x128xf32>, vector<128x1024xf32>, vector<4x1024xf32> -> vector<4x1024xf32>
    %c0_4 = arith.constant 0 : index
    %c0_5 = arith.constant 0 : index
    %4 = vector.load %arg4[%c0_4, %c0_5] : memref<4x1xf32, #tpu.memory_space<vmem>>, vector<4x1xf32>
    %5 = vector.broadcast %4 : vector<4x1xf32> to vector<4x1024xf32>
    %6 = arith.addf %3, %5 : vector<4x1024xf32>
    %cst_6 = arith.constant 0.000000e+00 : f32
    %7 = vector.broadcast %cst_6 : f32 to vector<4x1024xf32>
    %8 = arith.maximumf %6, %7 : vector<4x1024xf32>
    %c0_7 = arith.constant 0 : index
    %c0_8 = arith.constant 0 : index
    %c0_9 = arith.constant 0 : index
    %9 = vector.load %arg5[%c0_7, %c0_8, %c0_9] : memref<1x4x1024xf32, #tpu.memory_space<vmem>>, vector<1x4x1024xf32>
    %10 = vector.shape_cast %9 : vector<1x4x1024xf32> to vector<4x1024xf32>
    %11 = vector.shape_cast %8 : vector<4x1024xf32> to vector<1x4x1024xf32>
    tpu.vector_store %arg5[%c0_7, %c0_8, %c0_9], %11 {strides = array<i32>} : memref<1x4x1024xf32, #tpu.memory_space<vmem>>, vector<1x4x1024xf32>,
    return
  }
  func.func @transform_0(%arg0: i32, %arg1: i32) -> (i32, i32, i32) {
    %c0_i32 = arith.constant 0 : i32
    %c0_i32_0 = arith.constant 0 : i32
    return %arg0, %c0_i32, %arg1 : i32, i32, i32
  }
  func.func @transform_1(%arg0: i32, %arg1: i32) -> (i32, i32) {
    %c0_i32 = arith.constant 0 : i32
    %c0_i32_0 = arith.constant 0 : i32
    %c0_i32_1 = arith.constant 0 : i32
    return %c0_i32, %c0_i32_0 : i32, i32
  }
  func.func @transform_2(%arg0: i32, %arg1: i32) -> (i32, i32) {
    %c0_i32 = arith.constant 0 : i32
    %c0_i32_0 = arith.constant 0 : i32
    %c0_i32_1 = arith.constant 0 : i32
    return %c0_i32, %c0_i32_0 : i32, i32
  }
  func.func @transform_3(%arg0: i32, %arg1: i32) -> (i32, i32, i32) {
    %c0_i32 = arith.constant 0 : i32
    %c0_i32_0 = arith.constant 0 : i32
    return %arg0, %c0_i32, %arg1 : i32, i32, i32
  }
}

</mosaic_0001>

<bundles_post_ra>
// kernel: deconv_blk_pallas.1
= control target key start
LH: loop header
LB: loop body
LE: loop exit
PB: predicated region body
PF: predicated region fallthrough
CT: control target
= control target key end

     0   :  { %s709_s12 = smov 0   ;;  %s711_s13 = smov 0   ;;  %s886_s0 = inlined_call_operand.vmem [shape: f32[2,128,1024], index: 0, kind: input, shape index: {}]   ;;  %s887_s1 = inlined_call_operand.vmem [shape: f32[4,128], index: 1, kind: input, shape index: {}]   ;;  %s888_s2 = inlined_call_operand.vmem [shape: f32[4,1], index: 2, kind: input, shape index: {}]   ;;  %s889_s3 = inlined_call_operand.vmem [shape: f32[2,4,1024], index: 3, kind: output, shape index: {}]  }
   0x1   :  { %s713_s14 = smov 0  }
   0x2 LB: > { %s25_s15 = sadd.s32 1, %s682_s13  ;;  %p629_p0 = scmp.ge.s32.totalorder %s686_s14, 1  ;;  %s686_s14 = sphi %s713_s14, %s13_s14   ;;  %s682_s13 = sphi %s711_s13, %s891_s13   ;;  %s678_s12 = sphi %s709_s12, %s890_s12  }
   0x3   : > { %p27_p1 = scmp.ge.s32.totalorder %s25_s15, 2  ;;  %p158_p2 = scmp.lt.s32.totalorder %s686_s14, 3 }
   0x5   : > { %s893_s15 = smov (%p27_p1, %s25_s15), 0  ;;  %p159_p3 = pnand %p629_p0, %p158_p2 }
   0x6   : > { %p191_p4 = scmp.lt.s32.totalorder (!%p159_p3), %s678_s12, 1 }
   0x7   : > { %162 = sbr.rel (%p159_p3) target bundleno = 220 (0xdc), region = 32 }
   0xc   : > { %s895_s12 = smov (!%p191_p4, %s678_s12), 1  ;;  %vm525_vm0 = vcmask 1043456  }
   0xd   : > { %s636_s16 = sshll.u32 %s895_s12, 10  ;;  %s637_s24 = sshll.u32 %s895_s12, 5 }
   0xe   : > { %s733_s19 = scalar_lea.vmem %s886_s0, %s636_s16  ;;  %s208_s27 = scalar_lea.vmem %s889_s3, %s637_s24 }
   0xf   : > { %v333_v0 = vld [vmem:[%s733_s19 + $0x3d0] sm:$0xff]  ;;  %v334_v1 = vld [vmem:[%s733_s19 + $0x3d8] sm:$0xff]  ;;  %v332_v4 = vld [vmem:[%s733_s19 + $0x3c8] sm:$0xff] }
  0x10   : > { %v325_v2 = vld [vmem:[%s733_s19 + $0x390] sm:$0xff]  ;;  %385 = vmatpush.msra.mxu2 %v333_v0  ;;  %405 = vmatpush.msra.mxu3 %v334_v1  ;;  %v326_v3 = vld [vmem:[%s733_s19 + $0x398] sm:$0xff]  ;;  %v331_v7 = vld [vmem:[%s733_s19 + $0x3c0] sm:$0xff] }
  0x11   : > { %v317_v5 = vld [vmem:[%s733_s19 + $0x350] sm:$0xff]  ;;  %365 = vmatpush.msra.mxu1 %v332_v4  ;;  %v318_v6 = vld [vmem:[%s733_s19 + $0x358] sm:$0xff]  ;;  %v324_v8 = vld [vmem:[%s733_s19 + $0x388] sm:$0xff]  ;;  %345 = vmatpush.msra.mxu0 %v331_v7 }
  0x12   : > { %386 = vmatpush.msra.mxu2 %v325_v2  ;;  %406 = vmatpush.msra.mxu3 %v326_v3  ;;  %v323_v9 = vld [vmem:[%s733_s19 + $0x380] sm:$0xff]  ;;  %v309_v10 = vld [vmem:[%s733_s19 + $0x310] sm:$0xff]  ;;  %v310_v11 = vld [vmem:[%s733_s19 + $0x318] sm:$0xff] }
  0x13   : > { %366 = vmatpush.msra.mxu1 %v324_v8  ;;  %v316_v12 = vld [vmem:[%s733_s19 + $0x348] sm:$0xff]  ;;  %v315_v13 = vld [vmem:[%s733_s19 + $0x340] sm:$0xff]  ;;  %346 = vmatpush.msra.mxu0 %v323_v9  ;;  %v301_v15 = vld [vmem:[%s733_s19 + $0x2d0] sm:$0xff] }
  0x14   : > { %387 = vmatpush.msra.mxu2 %v317_v5  ;;  %407 = vmatpush.msra.mxu3 %v318_v6  ;;  %v308_v14 = vld [vmem:[%s733_s19 + $0x308] sm:$0xff]  ;;  %v302_v16 = vld [vmem:[%s733_s19 + $0x2d8] sm:$0xff]  ;;  %v307_v17 = vld [vmem:[%s733_s19 + $0x300] sm:$0xff] }
  0x15   : > { %367 = vmatpush.msra.mxu1 %v316_v12  ;;  %v300_v18 = vld [vmem:[%s733_s19 + $0x2c8] sm:$0xff]  ;;  %347 = vmatpush.msra.mxu0 %v315_v13  ;;  %v293_v19 = vld [vmem:[%s733_s19 + $0x290] sm:$0xff]  ;;  %v294_v20 = vld [vmem:[%s733_s19 + $0x298] sm:$0xff] }
  0x16   : > { %388 = vmatpush.msra.mxu2 %v309_v10  ;;  %408 = vmatpush.msra.mxu3 %v310_v11  ;;  %v299_v21 = vld [vmem:[%s733_s19 + $0x2c0] sm:$0xff]  ;;  %v292_v22 = vld [vmem:[%s733_s19 + $0x288] sm:$0xff]  ;;  %v285_v23 = vld [vmem:[%s733_s19 + $0x250] sm:$0xff] }
  0x17   : > { %368 = vmatpush.msra.mxu1 %v308_v14  ;;  %348 = vmatpush.msra.mxu0 %v307_v17  ;;  %v286_v24 = vld [vmem:[%s733_s19 + $0x258] sm:$0xff]  ;;  %v291_v25 = vld [vmem:[%s733_s19 + $0x280] sm:$0xff]  ;;  %v284_v26 = vld [vmem:[%s733_s19 + $0x248] sm:$0xff] }
  0x18   : > { %389 = vmatpush.msra.mxu2 %v301_v15  ;;  %409 = vmatpush.msra.mxu3 %v302_v16  ;;  %v277_v27 = vld [vmem:[%s733_s19 + $0x210] sm:$0xff]  ;;  %v278_v28 = vld [vmem:[%s733_s19 + $0x218] sm:$0xff]  ;;  %v283_v29 = vld [vmem:[%s733_s19 + $0x240] sm:$0xff] }
  0x19   : > { %369 = vmatpush.msra.mxu1 %v300_v18  ;;  %349 = vmatpush.msra.mxu0 %v299_v21  ;;  %v276_v30 = vld [vmem:[%s733_s19 + $0x208] sm:$0xff]  ;;  %v269_v31 = vld [vmem:[%s733_s19 + $0x1d0] sm:$0xff]  ;;  %v270_v32 = vld [vmem:[%s733_s19 + $0x1d8] sm:$0xff] }
  0x1a   : > { %390 = vmatpush.msra.mxu2 %v293_v19  ;;  %410 = vmatpush.msra.mxu3 %v294_v20  ;;  %v275_v33 = vld [vmem:[%s733_s19 + $0x200] sm:$0xff]  ;;  %v268_v34 = vld [vmem:[%s733_s19 + $0x1c8] sm:$0xff]  ;;  %v261_v35 = vld [vmem:[%s733_s19 + $0x190] sm:$0xff] }
  0x1b   : > { %370 = vmatpush.msra.mxu1 %v292_v22  ;;  %350 = vmatpush.msra.mxu0 %v291_v25  ;;  %v262_v36 = vld [vmem:[%s733_s19 + $0x198] sm:$0xff]  ;;  %v267_v37 = vld [vmem:[%s733_s19 + $0x1c0] sm:$0xff]  ;;  %v260_v38 = vld [vmem:[%s733_s19 + $0x188] sm:$0xff] }
  0x1c   : > { %391 = vmatpush.msra.mxu2 %v285_v23  ;;  %411 = vmatpush.msra.mxu3 %v286_v24  ;;  %v253_v39 = vld [vmem:[%s733_s19 + $0x150] sm:$0xff]  ;;  %v254_v40 = vld [vmem:[%s733_s19 + $0x158] sm:$0xff]  ;;  %v259_v41 = vld [vmem:[%s733_s19 + $0x180] sm:$0xff] }
  0x1d   : > { %371 = vmatpush.msra.mxu1 %v284_v26  ;;  %351 = vmatpush.msra.mxu0 %v283_v29  ;;  %v252_v42 = vld [vmem:[%s733_s19 + $0x148] sm:$0xff]  ;;  %v245_v43 = vld [vmem:[%s733_s19 + $0x110] sm:$0xff]  ;;  %v246_v44 = vld [vmem:[%s733_s19 + $0x118] sm:$0xff] }
  0x1e   : > { %392 = vmatpush.msra.mxu2 %v277_v27  ;;  %412 = vmatpush.msra.mxu3 %v278_v28  ;;  %v251_v45 = vld [vmem:[%s733_s19 + $0x140] sm:$0xff]  ;;  %v244_v46 = vld [vmem:[%s733_s19 + $0x108] sm:$0xff]  ;;  %v237_v47 = vld [vmem:[%s733_s19 + $0xd0] sm:$0xff] }
  0x1f   : > { %372 = vmatpush.msra.mxu1 %v276_v30  ;;  %352 = vmatpush.msra.mxu0 %v275_v33  ;;  %v238_v48 = vld [vmem:[%s733_s19 + $0xd8] sm:$0xff]  ;;  %v243_v49 = vld [vmem:[%s733_s19 + $0x100] sm:$0xff]  ;;  %v236_v50 = vld [vmem:[%s733_s19 + $0xc8] sm:$0xff] }
  0x20   : > { %393 = vmatpush.msra.mxu2 %v269_v31  ;;  %413 = vmatpush.msra.mxu3 %v270_v32  ;;  %v229_v51 = vld [vmem:[%s733_s19 + $0x90] sm:$0xff]  ;;  %v230_v52 = vld [vmem:[%s733_s19 + $0x98] sm:$0xff]  ;;  %v235_v53 = vld [vmem:[%s733_s19 + $0xc0] sm:$0xff] }
  0x21   : > { %373 = vmatpush.msra.mxu1 %v268_v34  ;;  %353 = vmatpush.msra.mxu0 %v267_v37  ;;  %v228_v54 = vld [vmem:[%s733_s19 + $0x88] sm:$0xff]  ;;  %v221_v55 = vld [vmem:[%s733_s19 + $0x50] sm:$0xff]  ;;  %v222_v56 = vld [vmem:[%s733_s19 + $0x58] sm:$0xff] }
  0x22   : > { %394 = vmatpush.msra.mxu2 %v261_v35  ;;  %414 = vmatpush.msra.mxu3 %v262_v36  ;;  %v227_v57 = vld [vmem:[%s733_s19 + $0x80] sm:$0xff]  ;;  %v220_v58 = vld [vmem:[%s733_s19 + $0x48] sm:$0xff]  ;;  %v213_v59 = vld [vmem:[%s733_s19 + $0x10] sm:$0xff] }
  0x23   : > { %374 = vmatpush.msra.mxu1 %v260_v38  ;;  %354 = vmatpush.msra.mxu0 %v259_v41  ;;  %v214_v60 = vld [vmem:[%s733_s19 + $0x18] sm:$0xff]  ;;  %v337_v61 = vld [vmem:[%s733_s19 + $0x3f0] sm:$0xff]  ;;  %v219_v63 = vld [vmem:[%s733_s19 + $0x40] sm:$0xff] }
  0x24   : > { %395 = vmatpush.msra.mxu2 %v253_v39  ;;  %415 = vmatpush.msra.mxu3 %v254_v40  ;;  %v338_v62 = vld [vmem:[%s733_s19 + $0x3f8] sm:$0xff]  ;;  %v212_v0 = vld [vmem:[%s733_s19 + $0x8] sm:$0xff]  ;;  %v329_v1 = vld [vmem:[%s733_s19 + $0x3b0] sm:$0xff] }
  0x25   : > { %375 = vmatpush.msra.mxu1 %v252_v42  ;;  %355 = vmatpush.msra.mxu0 %v251_v45  ;;  %v330_v2 = vld [vmem:[%s733_s19 + $0x3b8] sm:$0xff]  ;;  %v336_v3 = vld [vmem:[%s733_s19 + $0x3e8] sm:$0xff]  ;;  %v211_v4 = vld [vmem:[%s733_s19] sm:$0xff] }
  0x26   : > { %396 = vmatpush.msra.mxu2 %v245_v43  ;;  %416 = vmatpush.msra.mxu3 %v246_v44  ;;  %v321_v5 = vld [vmem:[%s733_s19 + $0x370] sm:$0xff]  ;;  %v322_v6 = vld [vmem:[%s733_s19 + $0x378] sm:$0xff]  ;;  %v335_v7 = vld [vmem:[%s733_s19 + $0x3e0] sm:$0xff] }
  0x27   : > { %376 = vmatpush.msra.mxu1 %v244_v46  ;;  %356 = vmatpush.msra.mxu0 %v243_v49  ;;  %v328_v8 = vld [vmem:[%s733_s19 + $0x3a8] sm:$0xff]  ;;  %v313_v9 = vld [vmem:[%s733_s19 + $0x330] sm:$0xff]  ;;  %v314_v10 = vld [vmem:[%s733_s19 + $0x338] sm:$0xff] }
  0x28   : > { %397 = vmatpush.msra.mxu2 %v237_v47  ;;  %417 = vmatpush.msra.mxu3 %v238_v48  ;;  %v327_v11 = vld [vmem:[%s733_s19 + $0x3a0] sm:$0xff]  ;;  %v320_v12 = vld [vmem:[%s733_s19 + $0x368] sm:$0xff]  ;;  %v305_v13 = vld [vmem:[%s733_s19 + $0x2f0] sm:$0xff] }
  0x29   : > { %377 = vmatpush.msra.mxu1 %v236_v50  ;;  %357 = vmatpush.msra.mxu0 %v235_v53  ;;  %v306_v14 = vld [vmem:[%s733_s19 + $0x2f8] sm:$0xff]  ;;  %v319_v15 = vld [vmem:[%s733_s19 + $0x360] sm:$0xff]  ;;  %v312_v16 = vld [vmem:[%s733_s19 + $0x328] sm:$0xff] }
  0x2a   : > { %398 = vmatpush.msra.mxu2 %v229_v51  ;;  %418 = vmatpush.msra.mxu3 %v230_v52  ;;  %v297_v17 = vld [vmem:[%s733_s19 + $0x2b0] sm:$0xff]  ;;  %v298_v18 = vld [vmem:[%s733_s19 + $0x2b8] sm:$0xff]  ;;  %v311_v19 = vld [vmem:[%s733_s19 + $0x320] sm:$0xff] }
  0x2b   : > { %378 = vmatpush.msra.mxu1 %v228_v54  ;;  %358 = vmatpush.msra.mxu0 %v227_v57  ;;  %v304_v20 = vld [vmem:[%s733_s19 + $0x2e8] sm:$0xff]  ;;  %v289_v21 = vld [vmem:[%s733_s19 + $0x270] sm:$0xff]  ;;  %v290_v22 = vld [vmem:[%s733_s19 + $0x278] sm:$0xff] }
  0x2c   : > { %399 = vmatpush.msra.mxu2 %v221_v55  ;;  %419 = vmatpush.msra.mxu3 %v222_v56  ;;  %v303_v23 = vld [vmem:[%s733_s19 + $0x2e0] sm:$0xff]  ;;  %v296_v24 = vld [vmem:[%s733_s19 + $0x2a8] sm:$0xff]  ;;  %v281_v25 = vld [vmem:[%s733_s19 + $0x230] sm:$0xff] }
  0x2d   : > { %379 = vmatpush.msra.mxu1 %v220_v58  ;;  %359 = vmatpush.msra.mxu0 %v219_v63  ;;  %v282_v26 = vld [vmem:[%s733_s19 + $0x238] sm:$0xff]  ;;  %v295_v27 = vld [vmem:[%s733_s19 + $0x2a0] sm:$0xff]  ;;  %v288_v28 = vld [vmem:[%s733_s19 + $0x268] sm:$0xff] }
  0x2e   : > { %400 = vmatpush.msra.mxu2 %v213_v59  ;;  %420 = vmatpush.msra.mxu3 %v214_v60  ;;  %v273_v29 = vld [vmem:[%s733_s19 + $0x1f0] sm:$0xff]  ;;  %v274_v30 = vld [vmem:[%s733_s19 + $0x1f8] sm:$0xff]  ;;  %v287_v31 = vld [vmem:[%s733_s19 + $0x260] sm:$0xff] }
  0x2f   : > { %380 = vmatpush.msra.mxu1 %v212_v0  ;;  %360 = vmatpush.msra.mxu0 %v211_v4  ;;  %v280_v32 = vld [vmem:[%s733_s19 + $0x228] sm:$0xff]  ;;  %v265_v33 = vld [vmem:[%s733_s19 + $0x1b0] sm:$0xff]  ;;  %v266_v34 = vld [vmem:[%s733_s19 + $0x1b8] sm:$0xff] }
  0x30   : > { %465 = vmatpush.msrb.mxu2 %v337_v61  ;;  %485 = vmatpush.msrb.mxu3 %v338_v62  ;;  %v279_v35 = vld [vmem:[%s733_s19 + $0x220] sm:$0xff]  ;;  %v272_v36 = vld [vmem:[%s733_s19 + $0x1e8] sm:$0xff]  ;;  %v257_v37 = vld [vmem:[%s733_s19 + $0x170] sm:$0xff] }
  0x31   : > { %445 = vmatpush.msrb.mxu1 %v336_v3  ;;  %425 = vmatpush.msrb.mxu0 %v335_v7  ;;  %v258_v38 = vld [vmem:[%s733_s19 + $0x178] sm:$0xff]  ;;  %v271_v39 = vld [vmem:[%s733_s19 + $0x1e0] sm:$0xff]  ;;  %v264_v40 = vld [vmem:[%s733_s19 + $0x1a8] sm:$0xff] }
  0x32   : > { %466 = vmatpush.msrb.mxu2 %v329_v1  ;;  %486 = vmatpush.msrb.mxu3 %v330_v2  ;;  %v249_v41 = vld [vmem:[%s733_s19 + $0x130] sm:$0xff]  ;;  %v250_v42 = vld [vmem:[%s733_s19 + $0x138] sm:$0xff]  ;;  %v210_v43 = vld [vmem:[%s887_s1] sm:$0xf]  ;;  %v688_v2 = vmov 0  }
  0x33   : > { %446 = vmatpush.msrb.mxu1 %v328_v8  ;;  %426 = vmatpush.msrb.mxu0 %v327_v11  ;;  %v263_v44 = vld [vmem:[%s733_s19 + $0x1a0] sm:$0xff]  ;;  %v256_v45 = vld [vmem:[%s733_s19 + $0x168] sm:$0xff]  ;;  %v241_v46 = vld [vmem:[%s733_s19 + $0xf0] sm:$0xff] }
  0x34   : > { %467 = vmatpush.msrb.mxu2 %v321_v5  ;;  %487 = vmatpush.msrb.mxu3 %v322_v6  ;;  %v242_v47 = vld [vmem:[%s733_s19 + $0xf8] sm:$0xff]  ;;  %v255_v48 = vld [vmem:[%s733_s19 + $0x160] sm:$0xff]  ;;  %v248_v49 = vld [vmem:[%s733_s19 + $0x128] sm:$0xff] }
  0x35   : > { %447 = vmatpush.msrb.mxu1 %v320_v12  ;;  %427 = vmatpush.msrb.mxu0 %v319_v15  ;;  %v233_v50 = vld [vmem:[%s733_s19 + $0xb0] sm:$0xff]  ;;  %v234_v51 = vld [vmem:[%s733_s19 + $0xb8] sm:$0xff]  ;;  %v247_v52 = vld [vmem:[%s733_s19 + $0x120] sm:$0xff] }
  0x36   : > { %468 = vmatpush.msrb.mxu2 %v313_v9  ;;  %488 = vmatpush.msrb.mxu3 %v314_v10  ;;  %v240_v53 = vld [vmem:[%s733_s19 + $0xe8] sm:$0xff]  ;;  %v225_v54 = vld [vmem:[%s733_s19 + $0x70] sm:$0xff]  ;;  %v226_v55 = vld [vmem:[%s733_s19 + $0x78] sm:$0xff] }
  0x37   : > { %448 = vmatpush.msrb.mxu1 %v312_v16  ;;  %428 = vmatpush.msrb.mxu0 %v311_v19  ;;  %v239_v56 = vld [vmem:[%s733_s19 + $0xe0] sm:$0xff]  ;;  %v232_v57 = vld [vmem:[%s733_s19 + $0xa8] sm:$0xff]  ;;  %v217_v58 = vld [vmem:[%s733_s19 + $0x30] sm:$0xff] }
  0x38   : > { %469 = vmatpush.msrb.mxu2 %v305_v13  ;;  %489 = vmatpush.msrb.mxu3 %v306_v14  ;;  %v218_v59 = vld [vmem:[%s733_s19 + $0x38] sm:$0xff]  ;;  %v231_v60 = vld [vmem:[%s733_s19 + $0xa0] sm:$0xff]  ;;  %v224_v61 = vld [vmem:[%s733_s19 + $0x68] sm:$0xff] }
  0x39   : > { %449 = vmatpush.msrb.mxu1 %v304_v20  ;;  %429 = vmatpush.msrb.mxu0 %v303_v23  ;;  %v223_v62 = vld [vmem:[%s733_s19 + $0x60] sm:$0xff]  ;;  %v216_v63 = vld [vmem:[%s733_s19 + $0x28] sm:$0xff] }
  0x3a   : > { %470 = vmatpush.msrb.mxu2 %v297_v17  ;;  %490 = vmatpush.msrb.mxu3 %v298_v18  ;;  %v339_v0 = vld [vmem:[%s888_s2] sm:$0xf] }
  0x3b   : > { %450 = vmatpush.msrb.mxu1 %v296_v24  ;;  %430 = vmatpush.msrb.mxu0 %v295_v27  ;;  %v215_v1 = vld [vmem:[%s733_s19 + $0x20] sm:$0xff] }
  0x3c   : > { %471 = vmatpush.msrb.mxu2 %v289_v21  ;;  %491 = vmatpush.msrb.mxu3 %v290_v22 }
  0x3d   : > { %451 = vmatpush.msrb.mxu1 %v288_v28  ;;  %431 = vmatpush.msrb.mxu0 %v287_v31 }
  0x3e   : > { %472 = vmatpush.msrb.mxu2 %v281_v25  ;;  %492 = vmatpush.msrb.mxu3 %v282_v26 }
  0x3f   : > { %452 = vmatpush.msrb.mxu1 %v280_v32  ;;  %432 = vmatpush.msrb.mxu0 %v279_v35 }
  0x40   : > { %473 = vmatpush.msrb.mxu2 %v273_v29  ;;  %493 = vmatpush.msrb.mxu3 %v274_v30 }
  0x41   : > { %453 = vmatpush.msrb.mxu1 %v272_v36  ;;  %433 = vmatpush.msrb.mxu0 %v271_v39 }
  0x42   : > { %474 = vmatpush.msrb.mxu2 %v265_v33  ;;  %494 = vmatpush.msrb.mxu3 %v266_v34 }
  0x43   : > { %454 = vmatpush.msrb.mxu1 %v264_v40  ;;  %401 = vmatmul.f32.vlgmr.msra.gmra.mxu2 %v210_v43 }
  0x44   : > { %475 = vmatpush.msrb.mxu2 %v257_v37  ;;  %495 = vmatpush.msrb.mxu3 %v258_v38 }
  0x45   : > { %421 = vmatmul.f32.vlgmr.msra.gmra.mxu3 %v210_v43  ;;  %434 = vmatpush.msrb.mxu0 %v263_v44 }
  0x46   : > { %476 = vmatpush.msrb.mxu2 %v249_v41  ;;  %496 = vmatpush.msrb.mxu3 %v250_v42 }
  0x47   : > { %455 = vmatpush.msrb.mxu1 %v256_v45  ;;  %435 = vmatpush.msrb.mxu0 %v255_v48 }
  0x48   : > { %477 = vmatpush.msrb.mxu2 %v241_v46  ;;  %497 = vmatpush.msrb.mxu3 %v242_v47 }
  0x49   : > { %456 = vmatpush.msrb.mxu1 %v248_v49  ;;  %436 = vmatpush.msrb.mxu0 %v247_v52 }
  0x4a   : > { %478 = vmatpush.msrb.mxu2 %v233_v50  ;;  %498 = vmatpush.msrb.mxu3 %v234_v51 }
  0x4b   : > { %381 = vmatmul.f32.vlgmr.msra.gmra.mxu1 %v210_v43  ;;  %361 = vmatmul.f32.vlgmr.msra.gmra.mxu0 %v210_v43 }
  0x4c   : > { %457 = vmatpush.msrb.mxu1 %v240_v53  ;;  %479 = vmatpush.msrb.mxu2 %v225_v54 }
  0x4d   : > { %499 = vmatpush.msrb.mxu3 %v226_v55  ;;  %437 = vmatpush.msrb.mxu0 %v239_v56 }
  0x4e   : > { %458 = vmatpush.msrb.mxu1 %v232_v57  ;;  %480 = vmatpush.msrb.mxu2 %v217_v58 }
  0x4f   : > { %500 = vmatpush.msrb.mxu3 %v218_v59  ;;  %481 = vmatmul.f32.vlgmr.msrb.gmra.mxu2 %v210_v43 }
  0x50   : > { %501 = vmatmul.f32.vlgmr.msrb.gmra.mxu3 %v210_v43  ;;  %438 = vmatpush.msrb.mxu0 %v231_v60 }
  0x51   : > { %459 = vmatpush.msrb.mxu1 %v224_v61  ;;  %663 = vset.pattern.permute.xlu0 %v688_v2 }
  0x52   : > { %439 = vmatpush.msrb.mxu0 %v223_v62  ;;  %342 = vperm.xlu0 %663, %v339_v0  }
  0x53   : > { %460 = vmatpush.msrb.mxu1 %v216_v63 }
  0x54   : > { %461 = vmatmul.f32.vlgmr.msrb.gmra.mxu1 %v210_v43  ;;  %440 = vmatpush.msrb.mxu0 %v215_v1 }
  0x55   : > { %441 = vmatmul.f32.vlgmr.msrb.gmra.mxu0 %v210_v43 }
  0xc4   : > { %v343_v3 = vpop.permute.xlu0 %342 }
  0xc6   : > { %v402_v6 = vpop.f32.mrf.mxu2 }
  0xc7   : > { %v403_v9 = vadd.f32 %v402_v6, %v343_v3 }
  0xc8   : > { %v382_v4 = vpop.f32.mrf.mxu1  ;;  %v422_v7 = vpop.f32.mrf.mxu3 }
  0xc9   : > { %v383_v5 = vadd.f32 %v382_v4, %v343_v3  ;;  %v362_v8 = vpop.f32.mrf.mxu0  ;;  %v423_v10 = vadd.f32 %v422_v7, %v343_v3  ;;  %v507_v13 = vmax.f32 %v403_v9, 0.0 }
  0xca   : > { %v363_v11 = vadd.f32 %v362_v8, %v343_v3 }
  0xcb   : > { %v506_v12 = vmax.f32 %v383_v5, 0.0  ;;  %v508_v14 = vmax.f32 %v423_v10, 0.0 }
  0xcc   : > { %v505_v15 = vmax.f32 %v363_v11, 0.0 }
  0xcd   : > { %v521_v16 = vrot.slane %v506_v12, 4  ;;  %v522_v17 = vrot.slane %v508_v14, 4 }
  0xcf   : > { %v526_v18 = vsel %vm525_vm0, %v505_v15, %v521_v16  ;;  %v527_v19 = vsel %vm525_vm0, %v507_v13, %v522_v17 }
  0xd0   : > { %534 = vst [vmem:[%s208_s27] sm:$0xff] %v526_v18 }
  0xd1   : > { %535 = vst [vmem:[%s208_s27 + $0x8] sm:$0xff] %v527_v19  ;;  %v462_v20 = vpop.f32.mrf.mxu1 }
  0xd2   : > { %v463_v21 = vadd.f32 %v462_v20, %v343_v3  ;;  %v442_v22 = vpop.f32.mrf.mxu0  ;;  %v482_v23 = vpop.f32.mrf.mxu2 }
  0xd3   : > { %v443_v25 = vadd.f32 %v442_v22, %v343_v3  ;;  %v502_v26 = vpop.f32.mrf.mxu3  ;;  %v483_v27 = vadd.f32 %v482_v23, %v343_v3 }
  0xd4   : > { %v510_v24 = vmax.f32 %v463_v21, 0.0  ;;  %v503_v28 = vadd.f32 %v502_v26, %v343_v3 }
  0xd5   : > { %v509_v30 = vmax.f32 %v443_v25, 0.0  ;;  %v511_v33 = vmax.f32 %v483_v27, 0.0 }
  0xd6   : > { %v523_v29 = vrot.slane %v510_v24, 4  ;;  %v512_v31 = vmax.f32 %v503_v28, 0.0 }
  0xd8   : > { %v528_v32 = vsel %vm525_vm0, %v509_v30, %v523_v29  ;;  %v524_v34 = vrot.slane %v512_v31, 4 }
  0xd9   : > { %536 = vst [vmem:[%s208_s27 + $0x10] sm:$0xff] %v528_v32 }
  0xda   : > { %v529_v35 = vsel %vm525_vm0, %v511_v33, %v524_v34 }
  0xdb   : > { %537 = vst [vmem:[%s208_s27 + $0x18] sm:$0xff] %v529_v35 }
  0xdc PF: > { %s13_s14 = sadd.s32 1, %s686_s14   ;;  %s890_s12 = smov %s682_s13 }
  0xdd   : > { %p10_p5 = scmp.ge.s32.totalorder %s13_s14, 4   ;;  %s891_s13 = smov %s893_s15 }
  0xdf   :  { %12 = sbr.rel (!%p10_p5) target bundleno = 2 (0x2), region = 62 }

</bundles_post_ra>
